<compile_context>
chip_gen: v5e
topology: v5e:2x2
jax: 0.10.0
libtpu: 0.0.40
codegen_flags: <defaults>
</compile_context>

<pallas_src>
import functools
import math

import jax
import jax.numpy as jnp
from jax import lax
from jax.experimental import pallas as pl
from jax.experimental.pallas import tpu as pltpu


def _round_up(x, m):
    return ((x + m - 1) // m) * m


def _nll_column(logits_ref, targets_ref, *, sqrt_c):
    """Per-row NLL of cross_entropy(logmap0(x), t) for one (TB, C) tile -> (TB, 1) f32."""
    tb, C = logits_ref.shape
    x = logits_ref[...].astype(jnp.float32)                       # (TB, C)
    t = targets_ref[...]                                          # (TB, 1) int32
    ones_c = jnp.ones((C, 1), jnp.float32)                        # MXU reduction column

    # ---- logmap0 scale: artanh(sqrt_c*||x||) / (sqrt_c*||x||) ---------------
    norm2 = jnp.dot(x * x, ones_c, preferred_element_type=jnp.float32)  # (TB,1) MXU row-sum
    norm = jnp.sqrt(jnp.maximum(norm2, 1e-30))                    # ||x|| clamped >= 1e-15
    u = sqrt_c * norm
    u_c = jnp.minimum(u, 1.0 - 1e-5)                              # artanh domain clamp
    # artanh(u)/u: exact log form for moderate u (exact per-row divide),
    # Taylor series for small u (avoids f32 cancellation in 1 +/- u).
    exact = 0.5 * jnp.log((1.0 + u_c) / (1.0 - u_c)) / u
    u2 = u * u
    series = 1.0 + u2 * (1.0 / 3.0 + u2 * (0.2 + u2 * (1.0 / 7.0)))
    scale = jnp.where(u < 0.05, series, exact)                    # (TB,1), scale >= 1 > 0

    # ---- cross entropy without materializing e = x*scale separately ---------
    # scale > 0  =>  max(e) = scale * max(x)  =>  z = e - max(e) = scale*(x - max(x))
    mx = jnp.max(x, axis=-1, keepdims=True)                       # XLU (max has no MXU form)
    z = scale * (x - mx)                                          # (TB, C)
    class_idx = lax.broadcasted_iota(jnp.int32, z.shape, 1)
    target_z = jnp.dot(jnp.where(class_idx == t, z, 0.0), ones_c,
                       preferred_element_type=jnp.float32)        # (TB,1) MXU one-hot gather
    sumexp = jnp.dot(jnp.exp(z), ones_c,
                     preferred_element_type=jnp.float32)          # (TB,1) MXU row-sum
    return jnp.log(sumexp) - target_z                             # (TB, 1)


def _mobius_nll_kernel(logits_ref, targets_ref, nll_ref, *, sqrt_c):
    # reduction='none': per-row NLL column (padded rows clipped by the writeback).
    nll_ref[...] = _nll_column(logits_ref, targets_ref, sqrt_c=sqrt_c)


def _mobius_psum_kernel(logits_ref, targets_ref, out_ref, *, sqrt_c, batch):
    # reduction='mean'/'sum': one masked partial sum per grid step.
    tb = logits_ref.shape[0]
    nll = _nll_column(logits_ref, targets_ref, sqrt_c=sqrt_c)     # (TB, 1)
    row = lax.broadcasted_iota(jnp.int32, (tb, 1), 0)
    valid = (pl.program_id(0) * tb + row) < batch                 # mask padded rows
    masked = jnp.where(valid, nll, 0.0)
    partial8 = jnp.dot(jnp.ones((8, tb), jnp.float32), masked,
                       preferred_element_type=jnp.float32)        # (8,1), MXU column-sum
    out_ref[0] = jnp.broadcast_to(partial8, (8, 128))             # lane-dense (8,128) tile


def mobius_mlp_loss(logits, targets, *, curvature=-1.0, reduction="mean",
                    max_block_rows=1024):
    """logits: (B, C) float (any float dtype); targets: (B,) int.

    Returns a scalar for reduction in {'mean','sum'}, a (B,) f32 vector for 'none'.
    """
    B, C = logits.shape
    sqrt_c = math.sqrt(abs(float(curvature)))
    targets_2d = targets.astype(jnp.int32).reshape(B, 1)

    # ---- per-generation VMEM sizing -----------------------------------------
    try:
        vmem_cap = int(pltpu.get_tpu_info().vmem_capacity_bytes)
    except Exception:  # fall back to the smallest (v7x) capacity -> safe everywhere
        vmem_cap = 64 * 1024 * 1024
    # ~40 MiB limit on v7x (64 MiB cap), ~96 MiB on v5e/v6e (128 MiB cap).
    vmem_limit = max(16 * 1024 * 1024,
                     min((vmem_cap * 3) // 4, vmem_cap - 24 * 1024 * 1024))
    vmem_budget = (vmem_limit * 7) // 10

    # Tile sizing: 2 pipeline buffers of the native-dtype block + ~4 live f32
    # (TB, C) temporaries must fit the budget.
    itemsize = jnp.dtype(logits.dtype).itemsize
    per_row_bytes = C * (2 * itemsize + 4 * 4)
    tb = min(max_block_rows, max(8, vmem_budget // per_row_bytes))
    if B > 8:
        # Guarantee >= 2 grid steps so both TensorCores get work on v7x
        # ('parallel' batch axis); costs <= one extra grid step on v5e/v6e.
        tb = min(tb, _round_up((B + 1) // 2, 8))
    tb = min(tb, _round_up(B, 8))
    tb = max(8, (tb // 8) * 8)
    num_tiles = -(-B // tb)
    grid = (num_tiles,)

    compiler_params = pltpu.CompilerParams(
        dimension_semantics=("parallel",),
        vmem_limit_bytes=int(vmem_limit),
    )
    in_specs = [
        pl.BlockSpec((tb, C), lambda i: (i, 0)),   # logits tile (native dtype)
        pl.BlockSpec((tb, 1), lambda i: (i, 0)),   # targets tile
    ]

    if reduction in ("mean", "sum"):
        kernel = functools.partial(_mobius_psum_kernel, sqrt_c=sqrt_c, batch=B)
        psum = pl.pallas_call(
            kernel,
            out_shape=jax.ShapeDtypeStruct((num_tiles, 8, 128), jnp.float32),
            grid_spec=pltpu.PrefetchScalarGridSpec(
                num_scalar_prefetch=0,
                grid=grid,
                in_specs=in_specs,
                out_specs=pl.BlockSpec((1, 8, 128), lambda i: (i, 0, 0)),
            ),
            compiler_params=compiler_params,
        )(logits, targets_2d)
        total = jnp.sum(psum[:, 0, 0])            # one scalar per grid step
        if reduction == "mean":
            return total / jnp.float32(B)
        return total

    # reduction == 'none'
    kernel = functools.partial(_mobius_nll_kernel, sqrt_c=sqrt_c)
    nll = pl.pallas_call(
        kernel,
        out_shape=jax.ShapeDtypeStruct((B, 1), jnp.float32),
        grid_spec=pltpu.PrefetchScalarGridSpec(
            num_scalar_prefetch=0,
            grid=grid,
            in_specs=in_specs,
            out_specs=pl.BlockSpec((tb, 1), lambda i: (i, 0)),
        ),
        compiler_params=compiler_params,
    )(logits, targets_2d)
    return nll.reshape(B)


if __name__ == "__main__":
    key = jax.random.PRNGKey(0)
    kx, kt = jax.random.split(key)

    batch, num_classes = 8, 16
    # Points must lie inside the Poincare ball (||x|| < 1): scale random normals.
    logits = 0.1 * jax.random.normal(kx, (batch, num_classes), dtype=jnp.float32)
    targets = jax.random.randint(kt, (batch,), 0, num_classes, dtype=jnp.int32)

    def ref_loss(x, t, curvature=-1.0, reduction="mean"):
        sc = jnp.sqrt(jnp.abs(jnp.float32(curvature)))
        x = x.astype(jnp.float32)
        norm = jnp.maximum(jnp.sqrt(jnp.sum(x * x, -1, keepdims=True)), 1e-15)
        e = x * jnp.arctanh(jnp.minimum(sc * norm, 1.0 - 1e-5)) / (sc * norm)
        logp = jax.nn.log_softmax(e, axis=-1)
        nll = -jnp.take_along_axis(logp, t[:, None], axis=-1)[:, 0]
        if reduction == "mean":
            return jnp.mean(nll)
        if reduction == "sum":
            return jnp.sum(nll)
        return nll

    # Test 1: f32 input, 'mean' reduction (fused in-kernel partial sum).
    loss = mobius_mlp_loss(logits, targets, curvature=-1.0, reduction="mean")
    jax.block_until_ready(loss)
    ref = ref_loss(logits, targets)
    assert jnp.allclose(loss, ref, rtol=2e-3, atol=2e-3), (loss, ref)

    # Test 2: bf16 input, 'none' reduction, batch not a multiple of the tile
    # (grid of 2 with a partial last block -> exercises pipelining + clipping).
    b2 = 20
    logits2 = 0.2 * jax.random.normal(jax.random.PRNGKey(1), (b2, num_classes),
                                      dtype=jnp.bfloat16)
    targets2 = jax.random.randint(jax.random.PRNGKey(2), (b2,), 0, num_classes,
                                  dtype=jnp.int32)
    nll = mobius_mlp_loss(logits2, targets2, reduction="none", max_block_rows=16)
    jax.block_until_ready(nll)
    ref2 = ref_loss(logits2, targets2, reduction="none")
    assert nll.shape == (b2,)
    assert jnp.allclose(nll, ref2, rtol=2e-3, atol=2e-3), (nll, ref2)

    # Test 3: bf16 input, 'sum' reduction with a ragged last tile -> exercises
    # the in-kernel padded-row masking of the partial-sum path.
    loss3 = mobius_mlp_loss(logits2, targets2, reduction="sum", max_block_rows=16)
    jax.block_until_ready(loss3)
    ref3 = ref_loss(logits2, targets2, reduction="sum")
    assert jnp.allclose(loss3, ref3, rtol=2e-3, atol=2e-3), (loss3, ref3)

    print("KERNEL_OK")
</pallas_src>

<mosaic_0001>
module attributes {stable_mosaic.version = 11 : i64} {
  func.func @_mobius_psum_kernel(%arg0: i32, %arg1: memref<8x16xf32, #tpu.memory_space<vmem>>, %arg2: memref<8x1xi32, #tpu.memory_space<vmem>>, %arg3: memref<1x8x128xf32, #tpu.memory_space<vmem>>) attributes {dimension_semantics = [#tpu.dimension_semantics<parallel>], iteration_bounds = array<i64: 1>, scalar_prefetch = 0 : i64, scratch_operands = 0 : i64, tpu.core_type = #tpu.core_type<tc>, window_params = [{transform_indices = @transform_0, window_bounds = array<i64: 8, 16>}, {transform_indices = @transform_1, window_bounds = array<i64: 8, 1>}, {transform_indices = @transform_2, window_bounds = array<i64: 1, 8, 128>}]} {
    %c0 = arith.constant 0 : index
    %c0_0 = arith.constant 0 : index
    %0 = vector.load %arg1[%c0, %c0_0] : memref<8x16xf32, #tpu.memory_space<vmem>>, vector<8x16xf32>
    %c0_1 = arith.constant 0 : index
    %c0_2 = arith.constant 0 : index
    %1 = vector.load %arg2[%c0_1, %c0_2] : memref<8x1xi32, #tpu.memory_space<vmem>>, vector<8x1xi32>
    %cst = arith.constant 1.000000e+00 : f32
    %2 = vector.broadcast %cst : f32 to vector<16x1xf32>
    %3 = arith.mulf %0, %0 : vector<8x16xf32>
    %cst_3 = arith.constant dense<0.000000e+00> : vector<8x1xf32>
    %4 = tpu.matmul %3, %2, %cst_3 {dimension_numbers = #tpu.dot_dimension_numbers<[1], [0], [0], [1], [0, 0, 1, 1], [], []>} : vector<8x16xf32>, vector<16x1xf32>, vector<8x1xf32> -> vector<8x1xf32>
    %cst_4 = arith.constant 1.000000e-30 : f32
    %5 = vector.broadcast %cst_4 : f32 to vector<8x1xf32>
    %6 = arith.maximumf %4, %5 : vector<8x1xf32>
    %7 = math.sqrt %6 : vector<8x1xf32>
    %cst_5 = arith.constant 1.000000e+00 : f32
    %8 = vector.broadcast %cst_5 : f32 to vector<8x1xf32>
    %9 = arith.mulf %8, %7 : vector<8x1xf32>
    %cst_6 = arith.constant 0.999989986 : f32
    %10 = vector.broadcast %cst_6 : f32 to vector<8x1xf32>
    %11 = arith.minimumf %9, %10 : vector<8x1xf32>
    %cst_7 = arith.constant 1.000000e+00 : f32
    %12 = vector.broadcast %cst_7 : f32 to vector<8x1xf32>
    %13 = arith.addf %12, %11 : vector<8x1xf32>
    %cst_8 = arith.constant 1.000000e+00 : f32
    %14 = vector.broadcast %cst_8 : f32 to vector<8x1xf32>
    %15 = arith.subf %14, %11 : vector<8x1xf32>
    %16 = arith.divf %13, %15 : vector<8x1xf32>
    %17 = math.log %16 : vector<8x1xf32>
    %cst_9 = arith.constant 5.000000e-01 : f32
    %18 = vector.broadcast %cst_9 : f32 to vector<8x1xf32>
    %19 = arith.mulf %18, %17 : vector<8x1xf32>
    %20 = arith.divf %19, %9 : vector<8x1xf32>
    %21 = arith.mulf %9, %9 : vector<8x1xf32>
    %cst_10 = arith.constant 0.142857149 : f32
    %22 = vector.broadcast %cst_10 : f32 to vector<8x1xf32>
    %23 = arith.mulf %21, %22 : vector<8x1xf32>
    %cst_11 = arith.constant 2.000000e-01 : f32
    %24 = vector.broadcast %cst_11 : f32 to vector<8x1xf32>
    %25 = arith.addf %24, %23 : vector<8x1xf32>
    %26 = arith.mulf %21, %25 : vector<8x1xf32>
    %cst_12 = arith.constant 0.333333343 : f32
    %27 = vector.broadcast %cst_12 : f32 to vector<8x1xf32>
    %28 = arith.addf %27, %26 : vector<8x1xf32>
    %29 = arith.mulf %21, %28 : vector<8x1xf32>
    %cst_13 = arith.constant 1.000000e+00 : f32
    %30 = vector.broadcast %cst_13 : f32 to vector<8x1xf32>
    %31 = arith.addf %30, %29 : vector<8x1xf32>
    %cst_14 = arith.constant 5.000000e-02 : f32
    %32 = vector.broadcast %cst_14 : f32 to vector<8x1xf32>
    %33 = arith.cmpf olt, %9, %32 : vector<8x1xf32>
    %34 = arith.select %33, %31, %20 : vector<8x1xi1>, vector<8x1xf32>
    %cst_15 = arith.constant dense<0xFF800000> : vector<8xf32>
    %35 = vector.multi_reduction <maximumf>, %0, %cst_15 [1] : vector<8x16xf32> to vector<8xf32>
    %36 = vector.shape_cast %35 : vector<8xf32> to vector<8x1xf32>
    %37 = vector.broadcast %36 : vector<8x1xf32> to vector<8x16xf32>
    %38 = arith.subf %0, %37 : vector<8x16xf32>
    %39 = vector.broadcast %34 : vector<8x1xf32> to vector<8x16xf32>
    %40 = arith.mulf %39, %38 : vector<8x16xf32>
    %41 = tpu.iota {dimensions = array<i32: 1>} : vector<8x16xi32>
    %42 = vector.broadcast %1 : vector<8x1xi32> to vector<8x16xi32>
    %43 = arith.cmpi eq, %41, %42 : vector<8x16xi32>
    %cst_16 = arith.constant 0.000000e+00 : f32
    %44 = vector.broadcast %cst_16 : f32 to vector<8x16xf32>
    %45 = arith.select %43, %40, %44 : vector<8x16xi1>, vector<8x16xf32>
    %cst_17 = arith.constant dense<0.000000e+00> : vector<8x1xf32>
    %46 = tpu.matmul %45, %2, %cst_17 {dimension_numbers = #tpu.dot_dimension_numbers<[1], [0], [0], [1], [0, 0, 1, 1], [], []>} : vector<8x16xf32>, vector<16x1xf32>, vector<8x1xf32> -> vector<8x1xf32>
    %47 = math.exp %40 : vector<8x16xf32>
    %cst_18 = arith.constant dense<0.000000e+00> : vector<8x1xf32>
    %48 = tpu.matmul %47, %2, %cst_18 {dimension_numbers = #tpu.dot_dimension_numbers<[1], [0], [0], [1], [0, 0, 1, 1], [], []>} : vector<8x16xf32>, vector<16x1xf32>, vector<8x1xf32> -> vector<8x1xf32>
    %49 = math.log %48 : vector<8x1xf32>
    %50 = arith.subf %49, %46 : vector<8x1xf32>
    %51 = tpu.iota {dimensions = array<i32: 0>} : vector<8x1xi32>
    %c8_i32 = arith.constant 8 : i32
    %52 = arith.muli %arg0, %c8_i32 : i32
    %53 = vector.broadcast %52 : i32 to vector<8x1xi32>
    %54 = arith.addi %53, %51 : vector<8x1xi32>
    %c8_i32_19 = arith.constant 8 : i32
    %55 = vector.broadcast %c8_i32_19 : i32 to vector<8x1xi32>
    %56 = arith.cmpi slt, %54, %55 : vector<8x1xi32>
    %cst_20 = arith.constant 0.000000e+00 : f32
    %57 = vector.broadcast %cst_20 : f32 to vector<8x1xf32>
    %58 = arith.select %56, %50, %57 : vector<8x1xi1>, vector<8x1xf32>
    %cst_21 = arith.constant 1.000000e+00 : f32
    %59 = vector.broadcast %cst_21 : f32 to vector<8x8xf32>
    %cst_22 = arith.constant dense<0.000000e+00> : vector<8x1xf32>
    %60 = tpu.matmul %59, %58, %cst_22 {dimension_numbers = #tpu.dot_dimension_numbers<[1], [0], [0], [1], [0, 0, 1, 1], [], []>} : vector<8x8xf32>, vector<8x1xf32>, vector<8x1xf32> -> vector<8x1xf32>
    %61 = vector.shape_cast %60 : vector<8x1xf32> to vector<8x1xf32>
    %62 = vector.broadcast %61 : vector<8x1xf32> to vector<8x128xf32>
    %c0_23 = arith.constant 0 : index
    %c0_24 = arith.constant 0 : index
    %c0_25 = arith.constant 0 : index
    %63 = vector.load %arg3[%c0_23, %c0_24, %c0_25] : memref<1x8x128xf32, #tpu.memory_space<vmem>>, vector<1x8x128xf32>
    %64 = vector.shape_cast %63 : vector<1x8x128xf32> to vector<8x128xf32>
    %65 = vector.shape_cast %62 : vector<8x128xf32> to vector<1x8x128xf32>
    tpu.vector_store %arg3[%c0_23, %c0_24, %c0_25], %65 {strides = array<i32>} : memref<1x8x128xf32, #tpu.memory_space<vmem>>, vector<1x8x128xf32>,
    return
  }
  func.func @transform_0(%arg0: i32) -> (i32, i32) {
    %c0_i32 = arith.constant 0 : i32
    %c0_i32_0 = arith.constant 0 : i32
    return %arg0, %c0_i32 : i32, i32
  }
  func.func @transform_1(%arg0: i32) -> (i32, i32) {
    %c0_i32 = arith.constant 0 : i32
    %c0_i32_0 = arith.constant 0 : i32
    return %arg0, %c0_i32 : i32, i32
  }
  func.func @transform_2(%arg0: i32) -> (i32, i32, i32) {
    %c0_i32 = arith.constant 0 : i32
    %c0_i32_0 = arith.constant 0 : i32
    %c0_i32_1 = arith.constant 0 : i32
    return %arg0, %c0_i32, %c0_i32_0 : i32, i32, i32
  }
}

</mosaic_0001>

<bundles_post_ra>
// kernel: tpu_custom_call.1
= control target key start
LH: loop header
LB: loop body
LE: loop exit
PB: predicated region body
PF: predicated region fallthrough
CT: control target
= control target key end

     0   :  { %s309_s0 = inlined_call_operand.vmem [shape: f32[8,16], index: 0, kind: input, shape index: {}]   ;;  %s310_s1 = inlined_call_operand.vmem [shape: s32[8,1], index: 1, kind: input, shape index: {}]   ;;  %s311_s2 = inlined_call_operand.hbm [shape: f32[1,8,128], index: 2, kind: output, shape index: {}]  }
   0x1   :  { %v286_v0 = vld [vmem:[%s309_s0] sm:$0xff] }
   0x2   :  { %7 = vsyncpa [#allocation3], 0  ;;  %v265_v1 = vmov 1.0   ;;  %v14_v2 = vmul.f32 %v286_v0, %v286_v0  ;;  %vm15_vm0 = vcmask 130048   ;;  %v266_v4 = vmov 0   ;;  %v13_v19 = vld [vmem:[%s310_s1] sm:$0xff] }
   0x3   :  { %33 = vmatpush.msra.mxu0 %v265_v1  ;;  %131 = vmatpush.msra.mxu1 %v265_v1  ;;  %v97_v3 = vsel %vm15_vm0, %v286_v0, -inf  ;;  %v107_v55 = vlaneseq  ;;  %vm172_vm13 = vcmask 64512   ;;  %s267_s1 = smov [#allocation2]   ;;  %s209_s15 = sshll.u32 %s311_s2, 4  ;;  %s210_s15 = int_to_ptr.hbm [resolvable:$true] %s209_s15 }
   0x4   :  { %156 = vmatpush.msra.mxu2 %v265_v1  ;;  %98 = vmax.xlane.f32.xlu0 %v97_v3  ;;  %s207_s12 = sshll.u32 %s267_s1, 4  ;;  %s208_s12 = int_to_ptr.vmem [resolvable:$true] %s207_s12 }
   0x5   :  { %34 = vmatpush.msra.mxu0 %v265_v1  ;;  %132 = vmatpush.msra.mxu1 %v265_v1  ;;  %v108_v56 = vand.u32 127, %v107_v55 }
   0x6   :  { %218 = vmatmul.msk.f32.vlgmr.msra.gmra.mxu0 %vm15_vm0, %v14_v2  ;;  %157 = vmatpush.msra.mxu2 %v265_v1 }
   0x7   :  { %226 = vset.pattern.permute.xlu1 %v266_v4  ;;  %225 = vset.pattern.permute.xlu0 %v266_v4 }
   0x8   :  { %110 = vperm.xlu1 %226, %v13_v19  }
  0x77   :  { %v99_v54 = vpop.xlane.xlu0 %98 }
  0x78   :  { %v100_v58 = vsub.f32 %v286_v0, %v99_v54 }
  0x7a   :  { %v111_v57 = vpop.permute.xlu1 %110 }
  0x7b   :  { %vm112_vm12 = vcmp.eq.s32.totalorder %v108_v56, %v111_v57 }
  0x83   :  { %v36_v5 = vpop.f32.mrf.mxu0 }
  0x84   :  { %v39_v6 = vmax.f32 %v36_v5, 1e-30 }
  0x86   :  { %227 = vrsqrt.f32 %v39_v6  ;;  %vm47_vm1 = vcmp.eq.f32.partialorder %v39_v6, inf  ;;  %v50_v14 = vand.u32 2147483648, %v39_v6  ;;  %vm49_vm2 = vcmp.eq.f32.partialorder %v39_v6, 0.0 }
  0x8c   :  { %v228_v7 = vpop.eup %227 }
  0x8d   :  { %v41_v8 = vmul.f32 %v228_v7, %v39_v6 }
  0x8f   :  { %v42_v9 = vmul.f32 %v228_v7, %v41_v8 }
  0x91   :  { %v43_v10 = vmul.f32 0.5, %v42_v9 }
  0x93   :  { %v44_v11 = vsub.f32 1.5, %v43_v10 }
  0x95   :  { %v45_v12 = vmul.f32 %v228_v7, %v44_v11 }
  0x97   :  { %v46_v13 = vmul.f32 %v45_v12, %v39_v6 }
  0x99   :  { %v48_v15 = vsel %vm47_vm1, %v39_v6, %v46_v13 }
  0x9a   :  { %v51_v16 = vsel %vm49_vm2, %v50_v14, %v48_v15 }
  0x9b   :  { %v52_v17 = vmin.f32 %v51_v16, 0.99999  ;;  %v88_v21 = vmul.f32 %v51_v16, %v51_v16  ;;  %v84_v42 = vand.u32 2147483648, %v51_v16  ;;  %vm78_vm8 = vweird.f32 %v51_v16 }
  0x9c   :  { %v82_v43 = vand.u32 2147483647, %v51_v16  ;;  %vm95_vm11 = vcmp.lt.f32.partialorder %v51_v16, 0.05 }
  0x9d   :  { %v54_v18 = vsub.f32 1.0, %v52_v17  ;;  %v89_v27 = vmul.f32 0.14285715, %v88_v21  ;;  %v53_v34 = vadd.f32 1.0, %v52_v17  ;;  %v85_v48 = vor.u32 1.1754944e-38, %v84_v42 }
  0x9e   :  { %vm83_vm10 = vcmp.eq.f32.partialorder %v82_v43, 8.507059e+37 }
  0x9f   :  { %229 = vrcp.f32 %v54_v18  ;;  %v66_v25 = vand.u32 2147483648, %v54_v18  ;;  %v64_v29 = vand.u32 2147483647, %v54_v18  ;;  %vm60_vm4 = vweird.f32 %v54_v18 }
  0xa0   :  { %231 = vrcp.f32 %v51_v16  ;;  %v90_v33 = vadd.f32 0.2, %v89_v27 }
  0xa1   :  { %v67_v31 = vor.u32 1.1754944e-38, %v66_v25  ;;  %vm65_vm6 = vcmp.eq.f32.partialorder %v64_v29, 8.507059e+37 }
  0xa2   :  { %v91_v39 = vmul.f32 %v90_v33, %v88_v21 }
  0xa4   :  { %v92_v41 = vadd.f32 0.33333334, %v91_v39 }
  0xa5   :  { %v230_v20 = vpop.eup %229 }
  0xa6   :  { %v232_v22 = vpop.eup %231  ;;  %v56_v23 = vmul.f32 %v230_v20, %v54_v18  ;;  %vm61_vm3 = vweird.f32 %v230_v20  ;;  %v93_v47 = vmul.f32 %v92_v41, %v88_v21 }
  0xa7   :  { %v74_v26 = vmul.f32 %v232_v22, %v51_v16  ;;  %vm62_vm5 = vmor %vm60_vm4, %vm61_vm3  ;;  %vm79_vm7 = vweird.f32 %v232_v22 }
  0xa8   :  { %v57_v24 = vsub.f32 1.0, %v56_v23  ;;  %vm80_vm9 = vmor %vm78_vm8, %vm79_vm7  ;;  %v94_v52 = vadd.f32 1.0, %v93_v47 }
  0xa9   :  { %v75_v32 = vsub.f32 1.0, %v74_v26 }
  0xaa   :  { %v58_v28 = vmul.f32 %v230_v20, %v57_v24 }
  0xab   :  { %v76_v38 = vmul.f32 %v232_v22, %v75_v32 }
  0xac   :  { %v59_v30 = vadd.f32 %v230_v20, %v58_v28 }
  0xad   :  { %v77_v40 = vadd.f32 %v232_v22, %v76_v38 }
  0xae   :  { %v63_v35 = vsel %vm62_vm5, %v230_v20, %v59_v30 }
  0xaf   :  { %v68_v36 = vsel %vm65_vm6, %v67_v31, %v63_v35  ;;  %v81_v46 = vsel %vm80_vm9, %v232_v22, %v77_v40 }
  0xb0   :  { %v69_v37 = vmul.f32 %v68_v36, %v53_v34  ;;  %v86_v50 = vsel %vm83_vm10, %v85_v48, %v81_v46 }
  0xb2   :  { %233 = vlog2.f32 %v69_v37 }
  0xb8   :  { %v234_v44 = vpop.eup %233 }
  0xb9   :  { %v71_v45 = vmul.f32 0.6931472, %v234_v44 }
  0xbb   :  { %v72_v49 = vmul.f32 0.5, %v71_v45 }
  0xbd   :  { %v87_v51 = vmul.f32 %v86_v50, %v72_v49 }
  0xbf   :  { %v96_v53 = vsel %vm95_vm11, %v94_v52, %v87_v51 }
  0xc0   :  { %103 = vperm.xlu0 %225, %v96_v53  }
 0x132   :  { %v104_v59 = vpop.permute.xlu0 %103 }
 0x133   :  { %v106_v60 = vmul.f32 %v104_v59, %v100_v58 }
 0x135   :  { %v137_v61 = vmul.f32 1.442695, %v106_v60  ;;  %v113_v62 = vsel %vm112_vm12, %v106_v60, 0.0 }
 0x136   :  { %219 = vmatmul.msk.f32.vlgmr.msra.gmra.mxu1 %vm15_vm0, %v113_v62 }
 0x137   :  { %235 = vpow2.f32 %v137_v61 }
 0x13d   :  { %v236_v63 = vpop.eup %235 }
 0x13e   :  { %220 = vmatmul.msk.f32.vlgmr.msra.gmra.mxu2 %vm15_vm0, %v236_v63 }
 0x1b3   :  { %v134_v5 = vpop.f32.mrf.mxu1 }
 0x1c1   :  { %v159_v2 = vpop.f32.mrf.mxu2 }
 0x1c2   :  { %237 = vlog2.f32 %v159_v2 }
 0x1c8   :  { %v238_v3 = vpop.eup %237 }
 0x1c9   :  { %v163_v4 = vmul.f32 0.6931472, %v238_v3 }
 0x1cb   :  { %v164_v6 = vsub.f32 %v163_v4, %v134_v5 }
 0x1cd   :  { %191 = vmatpush.msra.mxu3 %v164_v6 }
 0x1ce   :  { %221 = vmatmul.msk.f32.vlgmr.msra.gmra.mxu3 %vm172_vm13, %v265_v1 }
 0x251   :  { %v193_v0 = vpop.f32.mrf.mxu3 }
 0x252   :  { %198 = vperm.xlu1 %226, %v193_v0  }
 0x2c4   :  { %v199_v7 = vpop.permute.xlu1 %198 }
 0x2c5   :  { %201 = vst [vmem:[#allocation2] sm:$0xff] %v199_v7 }
 0x2c6   :  { %212 = dma.vmem_to_hbm [thread:$0]  %s208_s12, 128, %s210_s15, [#allocation3]  }
 0x2c7   :  { %263 = dma.done.wait [#allocation3], 128  }
 0x2c8   :  { %264 = vsyncadd [#allocation3], 4294967168 }
 0x2c9   :  { %217 = vsyncpa [#allocation3], 1 }

</bundles_post_ra>
